<compile_context>
chip_gen: v6e
topology: v6e:2x2x1
jax: 0.10.0
libtpu: 0.0.40
codegen_flags: <defaults>
</compile_context>

<pallas_src>
import functools

import jax
import jax.numpy as jnp
import numpy as np
from jax import lax
from jax.experimental import pallas as pl
from jax.experimental.pallas import tpu as pltpu


def _msr_kernel(lg_ref, xg_ref, xh_ref, wg_ref, wo_ref, o_ref, y_ref,
                *, h, dh, tq, tk):
    """One grid step = (batch b, query tile qi)."""
    qi = pl.program_id(1)
    q0 = pl.multiple_of(qi * tq, tq)

    lg = lg_ref[...]                                    # (h, 1, 1) log(gamma), f32
    xq_h = xh_ref[0, :, pl.ds(q0, tq), :]               # (h, tq, dh) bf16 queries
    xq = xg_ref[0]                                      # (tq, D)    bf16 gate input

    q_pos = q0 + lax.broadcasted_iota(jnp.int32, (tq, tk), 0)

    def kv_step(kt, acc):
        k0 = pl.multiple_of(kt * tk, tk)
        xk = xh_ref[0, :, pl.ds(k0, tk), :]             # (h, tk, dh) bf16 keys=values
        # Per-head scores, batched over heads, f32 accumulation on the MXU.
        s = jnp.einsum('hqd,hkd->hqk', xq_h, xk,
                       preferred_element_type=jnp.float32)        # (h, tq, tk)
        k_pos = k0 + lax.broadcasted_iota(jnp.int32, (tq, tk), 1)
        delta = (q_pos - k_pos).astype(jnp.float32)               # n - m
        # gamma^(n-m) for n >= m else 0.  Clamp before exp so the masked
        # (future) branch never overflows.
        decay = jnp.where(delta >= 0.0,
                          jnp.exp(jnp.maximum(delta, 0.0)[None, :, :] * lg),
                          0.0)                                    # (h, tq, tk)
        p = (s * decay).astype(jnp.bfloat16)
        return acc + jnp.einsum('hqk,hkd->hqd', p, xk,
                                preferred_element_type=jnp.float32)

    # Causality: key tiles strictly after the query tile are fully masked,
    # so skip them entirely (tq == tk).
    num_kv = qi + 1
    acc = lax.fori_loop(0, num_kv, kv_step,
                        jnp.zeros((h, tq, dh), jnp.float32))

    # Re-pack heads into the lane-dense (tq, D) layout via static-lane scratch
    # stores (no concatenate).
    for i in range(h):                                   # h is small & static
        y_ref[:, i * dh:(i + 1) * dh] = acc[i]
    y = y_ref[...]                                       # (tq, D) f32

    # Gated output projection: (SiLU(X W_G) * Y) W_O -- full-D MXU matmuls,
    # bf16 operands, f32 accumulation; SiLU in f32 (EUP sigmoid).
    g = jnp.dot(xq, wg_ref[...], preferred_element_type=jnp.float32)
    g = g * jax.nn.sigmoid(g)
    z = (g * y).astype(jnp.bfloat16)
    out = jnp.dot(z, wo_ref[...], preferred_element_type=jnp.float32)
    o_ref[0] = out.astype(o_ref.dtype)


def _pick_seq_tile(T):
    for t in (256, 128, 64, 32, 16, 8):
        if T % t == 0:
            return t
    return T


def msr_forward(x, w_g, w_o, gammas):
    B, T, D = x.shape
    h = int(gammas.shape[0])
    assert D % h == 0, "d_model must be divisible by number of heads"
    dh = D // h
    tq = tk = _pick_seq_tile(T)
    n_q = T // tq

    # Layout / dtype plumbing (outside the hot path):
    #  * bf16 copies of X / W_G / W_O feed the MXU and halve HBM traffic.
    #  * head-major (B, h, T, dh) view of X so the retention einsums are clean
    #    batched dot_generals with no in-kernel head transposes.
    #  * only the h log-gamma scalars are passed; decay is built in-kernel.
    x_bf = x.astype(jnp.bfloat16)
    xh_bf = x_bf.reshape(B, T, h, dh).transpose(0, 2, 1, 3)      # (B, h, T, dh)
    wg_bf = w_g.astype(jnp.bfloat16)
    wo_bf = w_o.astype(jnp.bfloat16)
    log_g = jnp.log(gammas.astype(jnp.float32)).reshape(h, 1, 1)

    kernel = functools.partial(_msr_kernel, h=h, dh=dh, tq=tq, tk=tk)

    flops = int(B * (4 * T * T * D + 4 * T * D * D))      # dense upper bound
    transc = int(B * (h * T * T + T * D))                 # exp (decay) + sigmoid
    bytes_accessed = int(2 * (x_bf.size + xh_bf.size + wg_bf.size + wo_bf.size)
                         + 4 * (B * T * D) + 4 * h)

    return pl.pallas_call(
        kernel,
        out_shape=jax.ShapeDtypeStruct((B, T, D), x.dtype),
        grid_spec=pltpu.PrefetchScalarGridSpec(
            num_scalar_prefetch=0,
            grid=(B, n_q),
            in_specs=[
                pl.BlockSpec((h, 1, 1), lambda b, q: (0, 0, 0)),        # log gamma
                pl.BlockSpec((1, tq, D), lambda b, q: (b, q, 0)),       # X query tile
                pl.BlockSpec((1, h, T, dh), lambda b, q: (b, 0, 0, 0)), # X heads (K/V)
                pl.BlockSpec((D, D), lambda b, q: (0, 0)),              # W_G
                pl.BlockSpec((D, D), lambda b, q: (0, 0)),              # W_O
            ],
            out_specs=pl.BlockSpec((1, tq, D), lambda b, q: (b, q, 0)),
            scratch_shapes=[pltpu.VMEM((tq, D), jnp.float32)],
        ),
        compiler_params=pltpu.CompilerParams(
            dimension_semantics=("parallel", "parallel")),
        cost_estimate=pl.CostEstimate(flops=flops,
                                      transcendentals=transc,
                                      bytes_accessed=bytes_accessed),
    )(log_g, x_bf, xh_bf, wg_bf, wo_bf)


def _msr_reference_numpy(x, w_g, w_o, gammas):
    """float64 numpy reference for correctness checking."""
    x = np.asarray(x, np.float64)
    w_g = np.asarray(w_g, np.float64)
    w_o = np.asarray(w_o, np.float64)
    gammas = np.asarray(gammas, np.float64)
    B, T, D = x.shape
    h = gammas.shape[0]
    dh = D // h
    idx = np.arange(T)
    diff = (idx[:, None] - idx[None, :]).astype(np.float64)
    decay = np.where(diff[None] >= 0,
                     gammas[:, None, None] ** np.maximum(diff[None], 0.0),
                     0.0)
    xh = x.reshape(B, T, h, dh)
    s = np.einsum('bnhd,bmhd->bhnm', xh, xh)
    y = np.einsum('bhnm,bmhd->bnhd', s * decay[None], xh).reshape(B, T, D)
    g = x @ w_g
    g = g * (1.0 / (1.0 + np.exp(-g)))                    # SiLU
    return (g * y) @ w_o


if __name__ == "__main__":
    # Small shapes consistent with the module: d_model=32, 4 heads, seq=8.
    B, T, D, H = 2, 8, 32, 4

    key = jax.random.PRNGKey(0)
    kx, kg, ko = jax.random.split(key, 3)
    x = jax.random.normal(kx, (B, T, D), dtype=jnp.float32)
    w_g = jax.random.normal(kg, (D, D), dtype=jnp.float32)   # torch.randn(d, d)
    w_o = jax.random.normal(ko, (D, D), dtype=jnp.float32)   # torch.randn(d, d)
    gammas = 1.0 - jnp.exp2(-5.0 - jnp.arange(H, dtype=jnp.float32))

    out = jax.block_until_ready(msr_forward(x, w_g, w_o, gammas))

    ref = _msr_reference_numpy(x, w_g, w_o, gammas)
    out64 = np.asarray(out, np.float64)
    assert np.isfinite(out64).all()
    rel_err = np.linalg.norm(out64 - ref) / np.linalg.norm(ref)
    assert rel_err < 2.5e-2, f"relative error too large: {rel_err}"
    print("KERNEL_OK")
</pallas_src>

<mosaic_0001>
module attributes {stable_mosaic.version = 11 : i64} {
  func.func @_msr_kernel(%arg0: i32, %arg1: i32, %arg2: memref<4x1x1xf32, #tpu.memory_space<vmem>>, %arg3: memref<1x8x32xbf16, #tpu.memory_space<vmem>>, %arg4: memref<1x4x8x8xbf16, #tpu.memory_space<vmem>>, %arg5: memref<32x32xbf16, #tpu.memory_space<vmem>>, %arg6: memref<32x32xbf16, #tpu.memory_space<vmem>>, %arg7: memref<1x8x32xf32, #tpu.memory_space<vmem>>, %arg8: memref<8x32xf32, #tpu.memory_space<vmem>>) attributes {dimension_semantics = [#tpu.dimension_semantics<parallel>, #tpu.dimension_semantics<parallel>], iteration_bounds = array<i64: 2, 1>, scalar_prefetch = 0 : i64, scratch_operands = 1 : i64, tpu.core_type = #tpu.core_type<tc>, window_params = [{pipeline_mode = #tpu.pipeline_mode<synchronous>, transform_indices = @transform_0, window_bounds = array<i64: 4, 1, 1>}, {transform_indices = @transform_1, window_bounds = array<i64: 1, 8, 32>}, {transform_indices = @transform_2, window_bounds = array<i64: 1, 4, 8, 8>}, {pipeline_mode = #tpu.pipeline_mode<synchronous>, transform_indices = @transform_3, window_bounds = array<i64: 32, 32>}, {pipeline_mode = #tpu.pipeline_mode<synchronous>, transform_indices = @transform_4, window_bounds = array<i64: 32, 32>}, {transform_indices = @transform_5, window_bounds = array<i64: 1, 8, 32>}]} {
    %c8_i32 = arith.constant 8 : i32
    %0 = arith.muli %arg1, %c8_i32 : i32
    %1 = tpu.assume_multiple %0, 8 : i32
    %c0 = arith.constant 0 : index
    %c0_0 = arith.constant 0 : index
    %c0_1 = arith.constant 0 : index
    %2 = vector.load %arg2[%c0, %c0_0, %c0_1] : memref<4x1x1xf32, #tpu.memory_space<vmem>>, vector<4x1x1xf32>
    %c0_2 = arith.constant 0 : index
    %c0_3 = arith.constant 0 : index
    %3 = arith.index_cast %1 : i32 to index
    %c0_4 = arith.constant 0 : index
    %4 = vector.load %arg4[%c0_2, %c0_3, %3, %c0_4] : memref<1x4x8x8xbf16, #tpu.memory_space<vmem>>, vector<1x4x8x8xbf16>
    %5 = vector.shape_cast %4 : vector<1x4x8x8xbf16> to vector<4x8x8xbf16>
    %c0_5 = arith.constant 0 : index
    %c0_6 = arith.constant 0 : index
    %c0_7 = arith.constant 0 : index
    %6 = vector.load %arg3[%c0_5, %c0_6, %c0_7] : memref<1x8x32xbf16, #tpu.memory_space<vmem>>, vector<1x8x32xbf16>
    %7 = vector.shape_cast %6 : vector<1x8x32xbf16> to vector<8x32xbf16>
    %8 = tpu.iota {dimensions = array<i32: 0>} : vector<8x8xi32>
    %9 = vector.broadcast %1 : i32 to vector<8x8xi32>
    %10 = arith.addi %9, %8 : vector<8x8xi32>
    %c1_i32 = arith.constant 1 : i32
    %11 = arith.addi %arg1, %c1_i32 : i32
    %cst = arith.constant 0.000000e+00 : f32
    %12 = vector.broadcast %cst : f32 to vector<4x8x8xf32>
    %c0_i32 = arith.constant 0 : i32
    %13 = arith.subi %11, %c0_i32 : i32
    %14 = arith.addi %c0_i32, %13 : i32
    %c1_i32_8 = arith.constant 1 : i32
    %15 = scf.for %arg9 = %c0_i32 to %14 step %c1_i32_8 iter_args(%arg10 = %12) -> (vector<4x8x8xf32>)  : i32 {
      %c8_i32_26 = arith.constant 8 : i32
      %44 = arith.muli %arg9, %c8_i32_26 : i32
      %45 = tpu.assume_multiple %44, 8 : i32
      %c0_27 = arith.constant 0 : index
      %c0_28 = arith.constant 0 : index
      %46 = arith.index_cast %45 : i32 to index
      %c0_29 = arith.constant 0 : index
      %47 = vector.load %arg4[%c0_27, %c0_28, %46, %c0_29] : memref<1x4x8x8xbf16, #tpu.memory_space<vmem>>, vector<1x4x8x8xbf16>
      %48 = vector.shape_cast %47 : vector<1x4x8x8xbf16> to vector<4x8x8xbf16>
      "tpu.trace_start"() <{level = 10 : i32, message = "hqd,hkd->hqk"}> : () -> ()
      %cst_30 = arith.constant dense<0.000000e+00> : vector<4x8x8xf32>
      %49 = tpu.matmul %5, %48, %cst_30 {dimension_numbers = #tpu.dot_dimension_numbers<[2], [2], [1], [1], [0, 0, 0, 1, 1, 1], [0], [0]>} : vector<4x8x8xbf16>, vector<4x8x8xbf16>, vector<4x8x8xf32> -> vector<4x8x8xf32>
      "tpu.trace_stop"() : () -> ()
      %50 = tpu.iota {dimensions = array<i32: 1>} : vector<8x8xi32>
      %51 = vector.broadcast %45 : i32 to vector<8x8xi32>
      %52 = arith.addi %51, %50 : vector<8x8xi32>
      %53 = arith.subi %10, %52 : vector<8x8xi32>
      %54 = arith.sitofp %53 : vector<8x8xi32> to vector<8x8xf32>
      %cst_31 = arith.constant 0.000000e+00 : f32
      %55 = vector.broadcast %cst_31 : f32 to vector<8x8xf32>
      %56 = arith.cmpf oge, %54, %55 : vector<8x8xf32>
      %cst_32 = arith.constant 0.000000e+00 : f32
      %57 = vector.broadcast %cst_32 : f32 to vector<8x8xf32>
      %58 = arith.maximumf %54, %57 : vector<8x8xf32>
      %59 = vector.shape_cast %58 : vector<8x8xf32> to vector<1x8x8xf32>
      %60 = vector.broadcast %59 : vector<1x8x8xf32> to vector<4x8x8xf32>
      %61 = vector.broadcast %2 : vector<4x1x1xf32> to vector<4x8x8xf32>
      %62 = arith.mulf %60, %61 : vector<4x8x8xf32>
      %63 = math.exp %62 : vector<4x8x8xf32>
      %cst_33 = arith.constant 0.000000e+00 : f32
      %64 = vector.shape_cast %56 : vector<8x8xi1> to vector<1x8x8xi1>
      %65 = vector.broadcast %64 : vector<1x8x8xi1> to vector<4x8x8xi1>
      %66 = vector.broadcast %cst_33 : f32 to vector<4x8x8xf32>
      %67 = arith.select %65, %63, %66 : vector<4x8x8xi1>, vector<4x8x8xf32>
      %68 = arith.mulf %49, %67 : vector<4x8x8xf32>
      %69 = arith.truncf %68 : vector<4x8x8xf32> to vector<4x8x8xbf16>
      "tpu.trace_start"() <{level = 10 : i32, message = "hqk,hkd->hqd"}> : () -> ()
      %cst_34 = arith.constant dense<0.000000e+00> : vector<4x8x8xf32>
      %70 = tpu.matmul %69, %48, %cst_34 {dimension_numbers = #tpu.dot_dimension_numbers<[2], [1], [1], [2], [0, 0, 0, 1, 1, 2], [0], [0]>} : vector<4x8x8xbf16>, vector<4x8x8xbf16>, vector<4x8x8xf32> -> vector<4x8x8xf32>
      "tpu.trace_stop"() : () -> ()
      %71 = arith.addf %arg10, %70 : vector<4x8x8xf32>
      scf.yield %71 : vector<4x8x8xf32>
    }
    %16 = vector.extract_strided_slice %15 {offsets = [0, 0, 0], sizes = [1, 8, 8], strides = [1, 1, 1]} : vector<4x8x8xf32> to vector<1x8x8xf32>
    %17 = vector.shape_cast %16 : vector<1x8x8xf32> to vector<8x8xf32>
    %c0_9 = arith.constant 0 : index
    %c0_10 = arith.constant 0 : index
    %18 = vector.load %arg8[%c0_9, %c0_10] : memref<8x32xf32, #tpu.memory_space<vmem>>, vector<8x8xf32>
    tpu.vector_store %arg8[%c0_9, %c0_10], %17 {strides = array<i32>} : memref<8x32xf32, #tpu.memory_space<vmem>>, vector<8x8xf32>,
    %19 = vector.extract_strided_slice %15 {offsets = [1, 0, 0], sizes = [1, 8, 8], strides = [1, 1, 1]} : vector<4x8x8xf32> to vector<1x8x8xf32>
    %20 = vector.shape_cast %19 : vector<1x8x8xf32> to vector<8x8xf32>
    %c0_11 = arith.constant 0 : index
    %c8 = arith.constant 8 : index
    %21 = vector.load %arg8[%c0_11, %c8] : memref<8x32xf32, #tpu.memory_space<vmem>>, vector<8x8xf32>
    tpu.vector_store %arg8[%c0_11, %c8], %20 {strides = array<i32>} : memref<8x32xf32, #tpu.memory_space<vmem>>, vector<8x8xf32>,
    %22 = vector.extract_strided_slice %15 {offsets = [2, 0, 0], sizes = [1, 8, 8], strides = [1, 1, 1]} : vector<4x8x8xf32> to vector<1x8x8xf32>
    %23 = vector.shape_cast %22 : vector<1x8x8xf32> to vector<8x8xf32>
    %c0_12 = arith.constant 0 : index
    %c16 = arith.constant 16 : index
    %24 = vector.load %arg8[%c0_12, %c16] : memref<8x32xf32, #tpu.memory_space<vmem>>, vector<8x8xf32>
    tpu.vector_store %arg8[%c0_12, %c16], %23 {strides = array<i32>} : memref<8x32xf32, #tpu.memory_space<vmem>>, vector<8x8xf32>,
    %25 = vector.extract_strided_slice %15 {offsets = [3, 0, 0], sizes = [1, 8, 8], strides = [1, 1, 1]} : vector<4x8x8xf32> to vector<1x8x8xf32>
    %26 = vector.shape_cast %25 : vector<1x8x8xf32> to vector<8x8xf32>
    %c0_13 = arith.constant 0 : index
    %c24 = arith.constant 24 : index
    %27 = vector.load %arg8[%c0_13, %c24] : memref<8x32xf32, #tpu.memory_space<vmem>>, vector<8x8xf32>
    tpu.vector_store %arg8[%c0_13, %c24], %26 {strides = array<i32>} : memref<8x32xf32, #tpu.memory_space<vmem>>, vector<8x8xf32>,
    %c0_14 = arith.constant 0 : index
    %c0_15 = arith.constant 0 : index
    %28 = vector.load %arg8[%c0_14, %c0_15] : memref<8x32xf32, #tpu.memory_space<vmem>>, vector<8x32xf32>
    %c0_16 = arith.constant 0 : index
    %c0_17 = arith.constant 0 : index
    %29 = vector.load %arg5[%c0_16, %c0_17] : memref<32x32xbf16, #tpu.memory_space<vmem>>, vector<32x32xbf16>
    %cst_18 = arith.constant dense<0.000000e+00> : vector<8x32xf32>
    %30 = tpu.matmul %7, %29, %cst_18 {dimension_numbers = #tpu.dot_dimension_numbers<[1], [0], [0], [1], [0, 0, 1, 1], [], []>} : vector<8x32xbf16>, vector<32x32xbf16>, vector<8x32xf32> -> vector<8x32xf32>
    %31 = arith.negf %30 : vector<8x32xf32>
    %32 = math.exp %31 : vector<8x32xf32>
    %cst_19 = arith.constant 1.000000e+00 : f32
    %33 = vector.broadcast %cst_19 : f32 to vector<8x32xf32>
    %34 = arith.addf %33, %32 : vector<8x32xf32>
    %35 = arith.divf %33, %34 : vector<8x32xf32>
    %36 = arith.mulf %30, %35 : vector<8x32xf32>
    %37 = arith.mulf %36, %28 : vector<8x32xf32>
    %38 = arith.truncf %37 : vector<8x32xf32> to vector<8x32xbf16>
    %c0_20 = arith.constant 0 : index
    %c0_21 = arith.constant 0 : index
    %39 = vector.load %arg6[%c0_20, %c0_21] : memref<32x32xbf16, #tpu.memory_space<vmem>>, vector<32x32xbf16>
    %cst_22 = arith.constant dense<0.000000e+00> : vector<8x32xf32>
    %40 = tpu.matmul %38, %39, %cst_22 {dimension_numbers = #tpu.dot_dimension_numbers<[1], [0], [0], [1], [0, 0, 1, 1], [], []>} : vector<8x32xbf16>, vector<32x32xbf16>, vector<8x32xf32> -> vector<8x32xf32>
    %c0_23 = arith.constant 0 : index
    %c0_24 = arith.constant 0 : index
    %c0_25 = arith.constant 0 : index
    %41 = vector.load %arg7[%c0_23, %c0_24, %c0_25] : memref<1x8x32xf32, #tpu.memory_space<vmem>>, vector<1x8x32xf32>
    %42 = vector.shape_cast %41 : vector<1x8x32xf32> to vector<8x32xf32>
    %43 = vector.shape_cast %40 : vector<8x32xf32> to vector<1x8x32xf32>
    tpu.vector_store %arg7[%c0_23, %c0_24, %c0_25], %43 {strides = array<i32>} : memref<1x8x32xf32, #tpu.memory_space<vmem>>, vector<1x8x32xf32>,
    return
  }
  func.func @transform_0(%arg0: i32, %arg1: i32) -> (i32, i32, i32) {
    %c0_i32 = arith.constant 0 : i32
    %c0_i32_0 = arith.constant 0 : i32
    %c0_i32_1 = arith.constant 0 : i32
    %c0_i32_2 = arith.constant 0 : i32
    return %c0_i32, %c0_i32_0, %c0_i32_1 : i32, i32, i32
  }
  func.func @transform_1(%arg0: i32, %arg1: i32) -> (i32, i32, i32) {
    %c0_i32 = arith.constant 0 : i32
    %c0_i32_0 = arith.constant 0 : i32
    return %arg0, %arg1, %c0_i32 : i32, i32, i32
  }
  func.func @transform_2(%arg0: i32, %arg1: i32) -> (i32, i32, i32, i32) {
    %c0_i32 = arith.constant 0 : i32
    %c0_i32_0 = arith.constant 0 : i32
    %c0_i32_1 = arith.constant 0 : i32
    %c0_i32_2 = arith.constant 0 : i32
    return %arg0, %c0_i32, %c0_i32_0, %c0_i32_1 : i32, i32, i32, i32
  }
  func.func @transform_3(%arg0: i32, %arg1: i32) -> (i32, i32) {
    %c0_i32 = arith.constant 0 : i32
    %c0_i32_0 = arith.constant 0 : i32
    %c0_i32_1 = arith.constant 0 : i32
    return %c0_i32, %c0_i32_0 : i32, i32
  }
  func.func @transform_4(%arg0: i32, %arg1: i32) -> (i32, i32) {
    %c0_i32 = arith.constant 0 : i32
    %c0_i32_0 = arith.constant 0 : i32
    %c0_i32_1 = arith.constant 0 : i32
    return %c0_i32, %c0_i32_0 : i32, i32
  }
  func.func @transform_5(%arg0: i32, %arg1: i32) -> (i32, i32, i32) {
    %c0_i32 = arith.constant 0 : i32
    %c0_i32_0 = arith.constant 0 : i32
    return %arg0, %arg1, %c0_i32 : i32, i32, i32
  }
}

</mosaic_0001>

<bundles_post_ra>
// kernel: tpu_custom_call.1
= control target key start
LH: loop header
LB: loop body
LE: loop exit
PB: predicated region body
PF: predicated region fallthrough
CT: control target
= control target key end

     0   :  { %s2048_s0 = inlined_call_operand.vmem [shape: f32[4,1,1], index: 0, kind: input, shape index: {}]   ;;  %s2049_s1 = inlined_call_operand.hbm [shape: bf16[2,8,32], index: 1, kind: input, shape index: {}]   ;;  %s2050_s2 = inlined_call_operand.hbm [shape: bf16[2,4,8,8], index: 2, kind: input, shape index: {}]   ;;  %s2051_s3 = inlined_call_operand.hbm [shape: bf16[32,32], index: 3, kind: input, shape index: {}]   ;;  %s2052_s4 = inlined_call_operand.hbm [shape: bf16[32,32], index: 4, kind: input, shape index: {}]   ;;  %s2053_s5 = inlined_call_operand.hbm [shape: f32[2,8,32], index: 5, kind: output, shape index: {}]  }
   0x1   :  { %2057 = sst [smem:[#allocation18_spill]] %s2049_s1 }
   0x2   :  { %2058 = sst [smem:[#allocation19_spill]] %s2051_s3 }
   0x3   :  { %2059 = sst [smem:[#allocation20_spill]] %s2052_s4 }
   0x4   :  { %10 = vsyncpa [#allocation4], 0 }
   0x5   :  { %12 = vsyncpa [#allocation4 + $0x1], 0 }
   0x6   :  { %13 = vsyncpa [#allocation7], 0 }
   0x7   :  { %15 = vsyncpa [#allocation7 + $0x1], 0 }
   0x8   :  { %16 = vsyncpa [#allocation10], 0 }
   0x9   :  { %17 = vsyncpa [#allocation5], 0 }
   0xa   :  { %19 = vsyncpa [#allocation5 + $0x1], 0  ;;  %s1685_s18 = smov 0   ;;  %s1687_s19 = smov 0  }
   0xb   :  { %s1689_s20 = smov 0   ;;  %s1691_s21 = smov 0  }
   0xc   :  { %s1693_s22 = smov 0   ;;  %s1695_s23 = smov 0  }
   0xd LB: > { %s1716_s24 = sadd.s32 4294967295, %s1618_s23   ;;  %s1114_s25 = sadd.s32 4294967294, %s1618_s23   ;;  %s1618_s23 = sphi %s1695_s23, %s25_s23   ;;  %s1614_s22 = sphi %s1693_s22, %s2082_s22   ;;  %s1610_s21 = sphi %s1691_s21, %s2081_s21   ;;  %s1606_s20 = sphi %s1689_s20, %s2080_s20   ;;  %s1602_s19 = sphi %s1687_s19, %s2079_s19   ;;  %s1598_s18 = sphi %s1685_s18, %s2078_s18  }
   0xe   : > { %p80_p0 = scmp.ne.s32.totalorder %s1602_s19, %s1598_s18  ;;  %p81_p1 = scmp.eq.s32.totalorder %s1716_s24, 0 }
   0xf   : > { %p174_p2 = scmp.eq.s32.totalorder %s1716_s24, 1  ;;  %p180_p3 = scmp.eq.s32.totalorder %s1114_s25, 1 }
  0x10   : > { %p1725_p4 = por %p81_p1, %p80_p0  ;;  %p1115_p5 = scmp.ge.s32.totalorder %s1618_s23, 1 }
  0x11   : > { %p1730_p6 = por %p180_p3, %p80_p0  ;;  %p187_p7 = scmp.lt.s32.totalorder %s1618_s23, 3 }
  0x12   : > { %s1640_s29 = smov [#allocation8]   ;;  %s1641_s7 = smov [#allocation9]  }
  0x13   : > { %p1735_p8 = pnand %p1115_p5, %p187_p7  ;;  %s202_s30 = sshll.u32 %s1640_s29, 4  ;;  %s203_s30 = int_to_ptr.vmem [resolvable:$true] %s202_s30 }
  0x14   : > { %s215_s8 = sshll.u32 %s1641_s7, 4  ;;  %s1409_s9 = scalar_lea.vmem %s203_s30, 256  ;;  %s216_s8 = int_to_ptr.vmem [resolvable:$true] %s215_s8 }
  0x15   : > { %p1256_p9 = pneg %p1735_p8  ;;  %p1410_p13 = scmp.ne.s32.totalorder %s203_s30, %s1409_s9 }
  0x16   : > { %p1417_p5 = scmp.lt.s32.totalorder %s203_s30, %s203_s30  ;;  %p1418_p7 = scmp.lt.s32.totalorder %s1409_s9, %s1409_s9 }
  0x17   : > { %p1744_p11 = pnand %p1256_p9, %p81_p1 }
  0x18   : > { %p1419_p10 = por %p1418_p7, %p1417_p5 }
  0x19   : > { %p1400_p12 = pneg %p1744_p11 }
  0x1b   : > { %p1412_p0 = pnand %p1410_p13, %p1400_p12 }
  0x1d   : > { %p1413_p3 = pneg %p1412_p0 }
  0x1f   : > { %p1420_p9 = pnand %p1419_p10, %p1413_p3 }
  0x21   : > { %1423 = shalt.err (!%p1420_p9)
}
  0x22   : > { %s2054_s10 = smov 64   ;;  %s2055_s11 = smov 4  }
  0x23   : > { %s2064_s3 = sld [smem:[#allocation19_spill]]  ;;  %s1435_s14 = scalar_lea.vmem %s216_s8, 256 }
  0x24   : > { %p1436_p13 = scmp.ne.s32.totalorder %s216_s8, %s1435_s14  ;;  %p1443_p10 = scmp.lt.s32.totalorder %s216_s8, %s216_s8 }
  0x25   : > { %p1444_p3 = scmp.lt.s32.totalorder %s1435_s14, %s1435_s14 }
  0x26   : > { %p1438_p0 = pnand %p1436_p13, %p1400_p12 }
  0x27   : > { %p1445_p7 = por %p1444_p3, %p1443_p10 }
  0x28   : > { %p1439_p5 = pneg %p1438_p0 }
  0x29   : > { %1259 = dma.hbm_to_vmem [thread:$0]  (!%p1744_p11), %s2064_s3, 256, %s203_s30, [#allocation7], %s2054_s10, %s2054_s10, %s2055_s11  }
  0x2a   : > { %p1446_p9 = pnand %p1445_p7, %p1439_p5 }
  0x2c   : > { %1449 = shalt.err (!%p1446_p9)
}
  0x2d   : > { %s2065_s4 = sld [smem:[#allocation20_spill]]  ;;  %s37_s17 = sadd.s32 1, %s1614_s22 }
  0x2e   : > { %s67_s25 = sadd.s32 1, %s1606_s20  ;;  %p39_p12 = scmp.ge.s32.totalorder %s37_s17, 2 }
  0x2f   : > { %p74_p13 = scmp.ne.s32.totalorder %s1606_s20, %s1602_s19  ;;  %p75_p0 = scmp.eq.s32.totalorder %s1618_s23, 0 }
  0x30   : > { %p1276_p5 = scmp.lt.s32.totalorder %s1618_s23, 2  ;;  %s2084_s17 = smov (%p39_p12, %s37_s17), 0 }
  0x31   : > { %2066 = sst [smem:[#allocation17_spill]] %s2084_s17  ;;  %p76_p10 = por %p75_p0, %p74_p13 }
  0x32   : > { %p1782_p3 = por %p174_p2, %p74_p13  ;;  %s62_s30 = ssub.s32 %s1614_s22, %s2084_s17 }
  0x33   : > { %1262 = dma.hbm_to_vmem [thread:$0]  (!%p1744_p11), %s2065_s4, 256, %s216_s8, [#allocation10], %s2054_s10, %s2054_s10, %s2055_s11  }
  0x34   : > { %s229_s6 = sand.u32 1, %s1606_s20   ;;  %p65_p7 = scmp.eq.s32.totalorder %s62_s30, 0 }
  0x35   : > { %s1119_s7 = sshll.u32 %s229_s6, 2  ;;  %s1120_s8 = sshll.u32 %s1614_s22, 6 }
  0x36   : > { %s1791_s9 = scalar_select %p65_p7, %s1606_s20, %s67_s25  }
  0x37   : > { %s2068_s1 = sld [smem:[#allocation18_spill]]  ;;  %s233_s15 = scalar_lea.vmem [#allocation3], %s1119_s7 }
  0x38   : > { %s241_s16 = sshll.u32 %s233_s15, 4  ;;  %p1798_p11 = pnand %p1276_p5, %p76_p10  ;;  %s242_s16 = int_to_ptr.vmem [resolvable:$true] %s241_s16 }
  0x39   : > { %s1121_s11 = sshll.u32 %s229_s6, 4  ;;  %s230_s30 = scalar_lea.sflag [#allocation4], %s229_s6 }
  0x3a   : > { %p1452_p2 = pneg %p1798_p11  ;;  %s1463_s25 = scalar_lea.vmem %s242_s16, 64 }
  0x3b   : > { %p1464_p9 = scmp.ne.s32.totalorder %s242_s16, %s1463_s25  ;;  %s1644_s7 = smov [#allocation3]  }
  0x3d   : > { %s239_s14 = scalar_lea.hbm %s2068_s1, %s1120_s8  ;;  %p1466_p12 = pnand %p1464_p9, %p1452_p2 }
  0x3e   : > { %s1468_s8 = sshll.u32 %s1644_s7, 4  ;;  %s1469_s8 = int_to_ptr.vmem [resolvable:$false] %s1468_s8 }
  0x3f   : > { %p1467_p13 = pneg %p1466_p12  ;;  %s1470_s12 = scalar_lea.vmem %s1469_s8, 128 }
  0x40   : > { %p1471_p0 = scmp.lt.s32.totalorder %s242_s16, %s1469_s8  ;;  %p1472_p5 = scmp.lt.s32.totalorder %s1470_s12, %s1463_s25 }
  0x42   : > { %p1473_p10 = por %p1472_p5, %p1471_p0 }
  0x44   : > { %p1474_p7 = pnand %p1473_p10, %p1467_p13 }
  0x46   : > { %1477 = shalt.err (!%p1474_p7)
}
  0x47   : > { %1266 = dma.hbm_to_vmem [thread:$0]  (!%p1798_p11), %s239_s14, 64, %s242_s16, %s230_s30  }
  0x48   : > { %s1155_s6 = sshll.u32 %s1614_s22, 8  ;;  %s252_s13 = scalar_lea.vmem [#allocation6], %s1121_s11 }
  0x49   : > { %s259_s15 = sshll.u32 %s252_s13, 4  ;;  %s248_s1 = sand.u32 1, %s1618_s23   ;;  %s260_s15 = int_to_ptr.vmem [resolvable:$true] %s259_s15 }
  0x4a   : > { %s258_s4 = scalar_lea.hbm %s2050_s2, %s1155_s6  ;;  %s249_s8 = scalar_lea.sflag [#allocation7], %s248_s1 }
  0x4b   : > { %s1491_s25 = scalar_lea.vmem %s260_s15, 256  ;;  %s1645_s12 = smov [#allocation6]  }
  0x4c   : > { %p1492_p9 = scmp.ne.s32.totalorder %s260_s15, %s1491_s25  ;;  %s1496_s17 = sshll.u32 %s1645_s12, 4  ;;  %s1497_s17 = int_to_ptr.vmem [resolvable:$false] %s1496_s17 }
  0x4d   : > { %s1498_s14 = scalar_lea.vmem %s1497_s17, 512  ;;  %p1499_p0 = scmp.lt.s32.totalorder %s260_s15, %s1497_s17 }
  0x4e   : > { %p1494_p12 = pnand %p1492_p9, %p1452_p2  ;;  %p1500_p5 = scmp.lt.s32.totalorder %s1498_s14, %s1491_s25 }
  0x50   : > { %p1495_p13 = pneg %p1494_p12  ;;  %p1501_p10 = por %p1500_p5, %p1499_p0 }
  0x52   : > { %p1502_p7 = pnand %p1501_p10, %p1495_p13 }
  0x54   : > { %1505 = shalt.err (!%p1502_p7)
}
  0x55   : > { %s2070_s3 = smov 4   ;;  %s2071_s11 = smov 64  }
  0x56   : > { %1269 = dma.hbm_to_vmem [thread:$0]  (!%p1798_p11), %s258_s4, 256, %s260_s15, %s249_s8, %s2071_s11, %s2071_s11, %s2070_s3  }
  0x57   : > { %271 = sbr.rel (%p1735_p8) target bundleno = 855 (0x357), region = 40  ;;  %s1825_s1 = sand.u32 (!%p1735_p8), 1, %s1602_s19  }
  0x58   : > { %s1125_s17 = sshll.u32 (!%p1735_p8), %s1825_s1, 2  ;;  %s274_s16 = scalar_lea.sflag (!%p1735_p8), [#allocation4], %s1825_s1 }
  0x59   : > { %s277_s30 = scalar_lea.vmem (!%p1735_p8), [#allocation3], %s1125_s17 }
  0x5c   : > { %1577 = dma.done.wait (%p1725_p4), %s274_s16, 64  }
  0x5d   : > { %1579 = vsyncadd (%p1725_p4), %s274_s16, 4294967232  ;;  %s282_s4 = sand.u32 1, %s1716_s24   ;;  %s1126_s28 = sshll.u32 %s1825_s1, 4 }
  0x5e   : > { %s283_s10 = scalar_lea.sflag [#allocation7], %s282_s4  ;;  %s1835_s6 = scalar_lea.vmem [#allocation6], %s1126_s28 }
  0x5f   : > { %1581 = dma.done.wait (%p1725_p4), %s283_s10, 256  }
  0x60   : > { %1583 = vsyncadd (%p1725_p4), %s283_s10, 4294967040 }
  0x61   : > { %1585 = dma.done.wait (%p81_p1), [#allocation7], 256  }
  0x62   : > { %1587 = vsyncadd (%p81_p1), [#allocation7], 4294967040 }
  0x63   : > { %1589 = dma.done.wait (%p81_p1), [#allocation10], 256  }
  0x64   : > { %1591 = vsyncadd (%p81_p1), [#allocation10], 4294967040  ;;  %s1129_s13 = sshll.u32 %s1825_s1, 3  ;;  %v341_v0 = vlaneseq  ;;  %v1856_v2 = vld [vmem:[%s2048_s0] ss:$0 sm:$0xff]  ;;  %v1889_v11 = vmov 0.0  }
  0x65   : > { %v1861_v3 = vld [vmem:[%s2048_s0 + $0x1] ss:$0 sm:$0xff]  ;;  %v1866_v4 = vld [vmem:[%s2048_s0 + $0x2] ss:$0 sm:$0xff]  ;;  %v1871_v5 = vld [vmem:[%s2048_s0 + $0x3] ss:$0 sm:$0xff] }
  0x66   : > { %v1851_v1 = vshrl.u32 %v341_v0, 7  ;;  %v1874_v6 = vld [vmem:[%s1835_s6] sm:$0xf]  ;;  %v1877_v7 = vld [vmem:[%s1835_s6 + $0x4] sm:$0xf]  ;;  %s1887_s3 = scalar_lea.vmem [#allocation11], %s1129_s13 }
  0x67   : > { %v1880_v8 = vld [vmem:[%s1835_s6 + $0x8] sm:$0xf]  ;;  %v1883_v9 = vld [vmem:[%s1835_s6 + $0xc] sm:$0xf]  ;;  %v1891_v12 = vmov 0.0   ;;  %v1893_v13 = vmov 0.0  }
  0x68   : > { %v1885_v10 = vld [vmem:[%s277_s30] sm:$0xf]  ;;  %v1895_v14 = vmov 0.0   ;;  %s1897_s11 = smov 0  }
  0x69 LB: >> { %v1646_v15 = vmov 0.0   ;;  %s1130_s17 = sshll.u32 %s1638_s11, 3  ;;  %vm1647_vm0 = vmmov 0   ;;  %v1648_v16 = vmov 0   ;;  %vm365_vm1 = vcmask 64512   ;;  %s349_s11 = sadd.s32 1, %s1638_s11   ;;  %s1638_s11 = sphi %s1897_s11, %s349_s11   ;;  %v1634_v14 = vphi %v1895_v14, %v2075_v14   ;;  %v1630_v13 = vphi %v1893_v13, %v2074_v13   ;;  %v1626_v12 = vphi %v1891_v12, %v2073_v12   ;;  %v1622_v11 = vphi %v1889_v11, %v2072_v11  }
  0x6a   : >> { %1178 = vmatprep.subr.bf16.mxu0 %v1646_v15  ;;  %1184 = vmatprep.subr.bf16.mxu1 %v1646_v15  ;;  %s357_s16 = sshra.s32 %s1130_s17, 3  ;;  %vm623_vm2 = vcmask 1043456   ;;  %v551_v27 = vand.u32 127, %v341_v0  ;;  %v552_v28 = vstv %s1130_s17  ;;  %p348_p1 = scmp.ge.s32.totalorder %s349_s11, 1 }
  0x6b   : >> { %1180 = vmatprep.mubr.msk.bf16.mxu0 %vm1647_vm0, %v1646_v15  ;;  %1186 = vmatprep.mubr.msk.bf16.mxu1 %vm1647_vm0, %v1646_v15  ;;  %s1131_s30 = sshll.u32 %s357_s16, 2  ;;  %vm1650_vm4 = vmmov (%p348_p1), 0   ;;  %s1651_s28 = smov (%p348_p1), 8   ;;  %vm842_vm5 = vcmask (%p348_p1), 261120   ;;  %v1392_v0 = vld [vmem:[#allocation9 + $0x8] sm:$0xff] (%p348_p1)   ;;  %vm811_vm6 = vcmask (%p348_p1), 130112  }
  0x6c   : >> { %1380 = vset.pattern.permute.xlu0 %v1648_v16  ;;  %1381 = vset.pattern.permute.xlu1 %v1648_v16  ;;  %s360_s4 = scalar_lea.vmem %s1835_s6, %s1131_s30 [#allocation6]  ;;  %v553_v29 = vadd.s32 %v552_v28, %v551_v27  ;;  %s1652_s10 = smov (%p348_p1), 24   ;;  %vm817_vm7 = vcmask (%p348_p1), 195712   ;;  %vm823_vm8 = vcmask (%p348_p1), 261312  }
  0x6d   : >> { %579 = vperm.xlu0 %1380, %v1856_v2   ;;  %587 = vperm.xlu1 %1381, %v1866_v4   ;;  %v361_v17 = vld [vmem:[%s360_s4] sm:$0xf]  ;;  %v362_v18 = vld [vmem:[%s360_s4 + $0x4] sm:$0xf]  ;;  %v363_v21 = vld [vmem:[%s360_s4 + $0x8] sm:$0xf] }
  0x6e   : >> { %v370_v19 = vsel %vm365_vm1, %v361_v17, 0  ;;  %v416_v20 = vsel %vm365_vm1, %v362_v18, 0  ;;  %v364_v22 = vld [vmem:[%s360_s4 + $0xc] sm:$0xf]  ;;  %v462_v23 = vsel %vm365_vm1, %v363_v21, 0  ;;  %v624_v25 = vsel %vm623_vm2, %v361_v17, 0 }
  0x6f   : >> { %1179 = vmatpush3.bf16.xpose.msra.mxu0 %v370_v19  ;;  %1185 = vmatpush3.bf16.xpose.msra.mxu1 %v416_v20  ;;  %v508_v24 = vsel %vm365_vm1, %v364_v22, 0  ;;  %v669_v26 = vsel %vm623_vm2, %v362_v18, 0  ;;  %v554_v30 = vsub.s32 %v1851_v1, %v553_v29  ;;  %v714_v57 = vsel %vm623_vm2, %v363_v21, 0  ;;  %s1653_s13 = smov (%p348_p1), 16   ;;  %v1393_v1 = vld [vmem:[#allocation9] sm:$0xff] (%p348_p1)   ;;  %s1152_s6 = sshll.u32 (%p348_p1), %s1610_s21, 7 }
  0x70   : >> { %1190 = vmatprep.subr.bf16.mxu0 %v1646_v15  ;;  %1196 = vmatprep.subr.bf16.mxu1 %v1646_v15  ;;  %v759_v58 = vsel %vm623_vm2, %v364_v22, 0  ;;  %s970_s26 = sshll.u32 (%p348_p1), %s1887_s3, 4  ;;  %s1998_s8 = scalar_lea.hbm (%p348_p1), %s2053_s5, %s1152_s6  ;;  %s2000_s26 = int_to_ptr.vmem [resolvable:$true] %s970_s26 }
  0x71   : >> { %583 = vperm.xlu0 %1380, %v1861_v3   ;;  %591 = vperm.xlu1 %1381, %v1871_v5   ;;  %v555_v31 = vcvt.s32.f32 %v554_v30  ;;  %s956_s24 = scalar_lea.sflag (%p348_p1), [#allocation5], %s1825_s1  ;;  %s1506_s25 = scalar_lea.vmem (%p348_p1), %s2000_s26, 128 }
  0x72   : > { %p1507_p4 = scmp.ne.s32.totalorder (%p348_p1), %s2000_s26, %s1506_s25  ;;  %s1654_s21 = smov (%p348_p1), [#allocation11]  }
  0x73   : >> { %v557_v33 = vmax.f32 %v555_v31, 0.0  ;;  %vm556_vm3 = vcmp.ge.f32.partialorder %v555_v31, 0.0  ;;  %s1510_s12 = sshll.u32 (%p348_p1), %s1654_s21, 4  ;;  %s1511_s12 = int_to_ptr.vmem [resolvable:$false] %s1510_s12 }
  0x74   : > { %p1508_p8 = pnand (%p348_p1), %p1507_p4, %p1782_p3  ;;  %s1512_s14 = scalar_lea.vmem (%p348_p1), %s1511_s12, 256 }
  0x75   : > { %p1513_p2 = scmp.lt.s32.totalorder (%p348_p1), %s2000_s26, %s1511_s12  ;;  %p1514_p9 = scmp.lt.s32.totalorder (%p348_p1), %s1512_s14, %s1506_s25 }
  0x76   : >> { %1181 = vmatmul.mubr.msk.bf16.vlgmr.msra.gmra.mxu0 %vm365_vm1, %v1874_v6  ;;  %1187 = vmatmul.mubr.msk.bf16.vlgmr.msra.gmra.mxu1 %vm365_vm1, %v1877_v7  ;;  %p1509_p11 = pneg (%p348_p1), %p1508_p8 }
  0x77   : >> { %1191 = vmatpush3.bf16.xpose.msra.mxu0 %v462_v23  ;;  %1197 = vmatpush3.bf16.xpose.msra.mxu1 %v508_v24  ;;  %p1515_p12 = por (%p348_p1), %p1514_p9, %p1513_p2 }
  0x78   : >> { %1192 = vmatprep.mubr.msk.bf16.mxu0 %vm1647_vm0, %v1646_v15  ;;  %1198 = vmatprep.mubr.msk.bf16.mxu1 %vm1647_vm0, %v1646_v15 }
  0x79   : >> { %1202 = vmatprep.subr.bf16.mxu0 %v1646_v15  ;;  %1208 = vmatprep.subr.bf16.mxu1 %v1646_v15  ;;  %p1516_p13 = pnand (%p348_p1), %p1515_p12, %p1509_p11 }
  0x7e   : >> { %1193 = vmatmul.mubr.msk.bf16.vlgmr.msra.gmra.mxu0 %vm365_vm1, %v1880_v8  ;;  %1199 = vmatmul.mubr.msk.bf16.vlgmr.msra.gmra.mxu1 %vm365_vm1, %v1883_v9 }
  0x7f   : >> { %1203 = vmatpush3.bf16.msra.mxu0 %v624_v25  ;;  %1209 = vmatpush3.bf16.msra.mxu1 %v669_v26 }
  0x80   : >> { %1204 = vmatprep.mubr.msk.bf16.mxu0 %vm1647_vm0, %v1646_v15  ;;  %1210 = vmatprep.mubr.msk.bf16.mxu1 %vm1647_vm0, %v1646_v15 }
  0x81   : >> { %1214 = vmatprep.subr.bf16.mxu0 %v1646_v15  ;;  %1220 = vmatprep.subr.bf16.mxu1 %v1646_v15 }
  0xe8   : >> { %v580_v32 = vpop.permute.xlu0 %579  ;;  %v588_v36 = vpop.permute.xlu1 %587 }
  0xe9   : >> { %v594_v35 = vmul.f32 %v580_v32, %v557_v33  ;;  %v596_v41 = vmul.f32 %v588_v36, %v557_v33 }
  0xeb   : >> { %v598_v38 = vmul.f32 1.442695, %v594_v35  ;;  %v602_v43 = vmul.f32 1.442695, %v596_v41 }
  0xec   : >> { %v584_v34 = vpop.permute.xlu0 %583  ;;  %v592_v40 = vpop.permute.xlu1 %591 }
  0xed   : >> { %v595_v37 = vmul.f32 %v584_v34, %v557_v33  ;;  %1382 = vpow2.f32 %v598_v38  ;;  %v597_v42 = vmul.f32 %v592_v40, %v557_v33 }
  0xef   : >> { %v600_v39 = vmul.f32 1.442695, %v595_v37  ;;  %v604_v44 = vmul.f32 1.442695, %v597_v42 }
  0xf1   : >> { %1384 = vpow2.f32 %v600_v39 }
  0xf2   : >> { %1386 = vpow2.f32 %v602_v43 }
  0xf3   : >> { %1388 = vpow2.f32 %v604_v44 }
  0xfa   : >> { %v1383_v45 = vpop.eup %1382 }
  0xfb   : >> { %v608_v48 = vsel %vm556_vm3, %v1383_v45, 0.0 }
  0xfe   : >> { %v1385_v46 = vpop.eup %1384 }
  0xff   : >> { %v609_v50 = vsel %vm556_vm3, %v1385_v46, 0.0  ;;  %v1387_v59 = vpop.eup %1386 }
 0x100   : >> { %v1389_v62 = vpop.eup %1388  ;;  %v610_v18 = vsel %vm556_vm3, %v1387_v59, 0.0 }
 0x101   : >> { %v611_v20 = vsel %vm556_vm3, %v1389_v62, 0.0 }
 0x136   : >> { %v406_v47 = vpop.f32.mrf.mxu0  ;;  %v452_v49 = vpop.f32.mrf.mxu1 }
 0x137   : >> { %v612_v51 = vmul.f32 %v608_v48, %v406_v47  ;;  %v613_v52 = vmul.f32 %v609_v50, %v452_v49  ;;  %v1390_v49 = vld [vmem:[#allocation8 + $0x8] sm:$0xff] (%p348_p1)   ;;  %v1649_v50 = vmov (%p348_p1), 0.0  }
 0x138   : >> { %v1182_v53 = vpop.f32.mrf.mxu0  ;;  %v1188_v54 = vpop.f32.mrf.mxu1 }
 0x139   : >> { %v616_v55 = vpack.c.bf16 %v612_v51, %v612_v51  ;;  %v617_v56 = vpack.c.bf16 %v613_v52, %v613_v52  ;;  %v1391_v51 = vld [vmem:[#allocation8] sm:$0xff] (%p348_p1)  }
 0x13a   : >> { %v409_v60 = vpop.f32.mrf.mxu0  ;;  %v455_v61 = vpop.f32.mrf.mxu1 }
 0x13b   : >> { %1205 = vmatmul.mubr.msk.bf16.vlgmr.msra.gmra.mxu0 %vm365_vm1, %v616_v55  ;;  %1211 = vmatmul.mubr.msk.bf16.vlgmr.msra.gmra.mxu1 %vm365_vm1, %v617_v56 }
 0x13c   : >> { %v1183_v63 = vpop.f32.mrf.mxu0  ;;  %v1189_v16 = vpop.f32.mrf.mxu1  ;;  %1215 = vmatpush3.bf16.msra.mxu0 %v714_v57  ;;  %1221 = vmatpush3.bf16.msra.mxu1 %v759_v58 }
 0x13d   : >> { %1216 = vmatprep.mubr.msk.bf16.mxu0 %vm1647_vm0, %v1646_v15  ;;  %1222 = vmatprep.mubr.msk.bf16.mxu1 %vm1647_vm0, %v1646_v15 }
 0x13e   : >> { %v498_v17 = vpop.f32.mrf.mxu0  ;;  %v544_v19 = vpop.f32.mrf.mxu1  ;;  %1226 = vmatprep.subr.bf16.mxu0 (%p348_p1), %v1649_v50  ;;  %1234 = vmatprep.subr.bf16.mxu1 (%p348_p1), %v1649_v50 }
 0x13f   : >> { %v614_v21 = vmul.f32 %v610_v18, %v498_v17  ;;  %v615_v22 = vmul.f32 %v611_v20, %v544_v19 }
 0x140   : >> { %v1194_v23 = vpop.f32.mrf.mxu0  ;;  %v1200_v24 = vpop.f32.mrf.mxu1 }
 0x141   : >> { %v618_v25 = vpack.c.bf16 %v614_v21, %v614_v21  ;;  %v619_v26 = vpack.c.bf16 %v615_v22, %v615_v22 }
 0x142   : >> { %v501_v27 = vpop.f32.mrf.mxu0  ;;  %v547_v28 = vpop.f32.mrf.mxu1 }
 0x143   : >> { %1217 = vmatmul.mubr.msk.bf16.vlgmr.msra.gmra.mxu0 %vm365_vm1, %v618_v25  ;;  %1223 = vmatmul.mubr.msk.bf16.vlgmr.msra.gmra.mxu1 %vm365_vm1, %v619_v26 }
 0x144   : >> { %v1195_v29 = vpop.f32.mrf.mxu0  ;;  %v1201_v15 = vpop.f32.mrf.mxu1  ;;  %1227 = vmatpush3.bf16.msra.mxu0 (%p348_p1), %v1390_v49  ;;  %1230 = vmatprep.mubr.msk.bf16.mxu0 (%p348_p1), %vm1650_vm4, %v1649_v50 }
 0x145   : > { %1228 = vmatprep.subr.bf16.mxu0 (%p348_p1), %v1649_v50  ;;  %1238 = vmatprep.mubr.msk.bf16.mxu1 (%p348_p1), %vm1650_vm4, %v1649_v50 }
 0x146   : > { %1235 = vmatpush3.bf16.msra.mxu1 (%p348_p1), %v1392_v0 }
 0x147   : > { %1236 = vmatprep.subr.bf16.mxu1 (%p348_p1), %v1649_v50 }
 0x148   : > { %1229 = vmatpush3.bf16.msra.mxu0 (%p348_p1), %v1391_v51 }
 0x14a   : > { %1237 = vmatpush3.bf16.msra.mxu1 (%p348_p1), %v1393_v1 }
 0x14b   : > { %1231 = vmatmul.mubr.msk.bf16.vlgmr.msra.gmra.mxu0 (%p348_p1), %vm842_vm5, %v1885_v10 }
 0x1fb   : >> { %v660_v30 = vpop.f32.mrf.mxu0  ;;  %v705_v32 = vpop.f32.mrf.mxu1 }
 0x1fc   : >> { %v801_v33 = vadd.f32 %v1634_v14, %v660_v30   ;;  %v802_v31 = vadd.f32 %v1630_v13, %v705_v32  }
 0x1fd   : >> { %v1206_v34 = vpop.f32.mrf.mxu0  ;;  %v1212_v35 = vpop.f32.mrf.mxu1 }
 0x1fe   : >> { %v2074_v13 = vmov %v802_v31  ;;  %806 = vst.msk [vmem:[#allocation2] sm:$0xff] (%p348_p1), %vm365_vm1, %v801_v33  ;;  %808 = vrot.lane.b32.xlu0 (%p348_p1), %v802_v31, %s1651_s28 }
 0x1ff   : >> { %v663_v36 = vpop.f32.mrf.mxu0  ;;  %v708_v37 = vpop.f32.mrf.mxu1 }
 0x201   : >> { %v1207_v38 = vpop.f32.mrf.mxu0  ;;  %v1213_v39 = vpop.f32.mrf.mxu1 }
 0x203   : >> { %v750_v40 = vpop.f32.mrf.mxu0  ;;  %v795_v41 = vpop.f32.mrf.mxu1 }
 0x204   : >> { %v803_v42 = vadd.f32 %v1626_v12, %v750_v40   ;;  %v804_v43 = vadd.f32 %v1622_v11, %v795_v41  }
 0x205   : >> { %v1218_v44 = vpop.f32.mrf.mxu0  ;;  %v1224_v45 = vpop.f32.mrf.mxu1 }
 0x206   : >> { %v2072_v11 = vmov %v804_v43  ;;  %v2073_v12 = vmov %v803_v42  ;;  %351 = sbr.rel (!%p348_p1) target bundleno = 105 (0x69), region = 115  ;;  %820 = vrot.lane.b32.xlu1 (%p348_p1), %v804_v43, %s1652_s10  ;;  %814 = vrot.lane.b32.xlu0 (%p348_p1), %v803_v42, %s1653_s13 }
 0x207   : >> { %v753_v46 = vpop.f32.mrf.mxu0  ;;  %v798_v47 = vpop.f32.mrf.mxu1 }
 0x209   : >> { %v1219_v48 = vpop.f32.mrf.mxu0  ;;  %v1225_v14 = vpop.f32.mrf.mxu1 }
 0x20a   : >> { %v2075_v14 = vmov %v801_v33 }
 0x20b   : > { %v880_v5 = vpop.f32.mrf.mxu0 }
 0x20c   : > { %v1147_v6 = vmul.f32 -1.442695, %v880_v5 }
 0x20d   : > { %v1232_v7 = vpop.f32.mrf.mxu0 }
 0x20e   : > { %1394 = vpow2.f32 %v1147_v6 }
 0x20f   : > { %v883_v8 = vpop.f32.mrf.mxu0 }
 0x211   : > { %v1233_v9 = vpop.f32.mrf.mxu0 }
 0x21b   : > { %v1395_v10 = vpop.eup %1394 }
 0x21c   : > { %v889_v11 = vadd.f32 1.0, %v1395_v10 }
 0x21e   : > { %1396 = vrcp.f32 %v889_v11 }
 0x22b   : > { %v1397_v12 = vpop.eup %1396 }
 0x22c   : > { %v892_v52 = vmul.f32 %v1397_v12, %v880_v5 }
 0x270   : > { %v809_v2 = vpop.permute.xlu0 %808 }
 0x271   : > { %812 = vst.msk [vmem:[#allocation2] sm:$0xff] %vm811_vm6, %v809_v2 }
 0x278   : > { %v821_v3 = vpop.permute.xlu1 %820  ;;  %v815_v4 = vpop.permute.xlu0 %814 }
 0x279   : > { %818 = vst.msk [vmem:[#allocation2] sm:$0xff] %vm817_vm7, %v815_v4 }
 0x27a   : > { %824 = vst.msk [vmem:[#allocation2] sm:$0xff] %vm823_vm8, %v821_v3 }
 0x281   : > { %v825_v13 = vld [vmem:[#allocation2] sm:$0xff] }
 0x282   : > { %v893_v53 = vmul.f32 %v892_v52, %v825_v13 }
 0x284   : > { %v894_v54 = vpack.c.bf16 %v893_v53, %v893_v53 }
 0x286   : > { %1239 = vmatmul.mubr.msk.bf16.vlgmr.msra.gmra.mxu1 %vm842_vm5, %v894_v54 }
 0x346   : > { %v948_v55 = vpop.f32.mrf.mxu1 }
 0x347   : > { %954 = vst.msk [vmem:[%s1887_s3] sm:$0xff] %vm842_vm5, %v948_v55 }
 0x348   : > { %v1240_v56 = vpop.f32.mrf.mxu1 }
 0x349   : > { %1519 = shalt.err (!%p1516_p13)
}
 0x34a   : > { %s1520_s3 = scalar_lea.hbm %s1998_s8, 128  ;;  %s1524_s17 = scalar_lea.hbm %s2053_s5, 256 }
 0x34b   : > { %p1521_p0 = scmp.ne.s32.totalorder %s1998_s8, %s1520_s3  ;;  %p1525_p7 = scmp.lt.s32.totalorder %s1998_s8, %s2053_s5 }
 0x34c   : > { %p1526_p1 = scmp.lt.s32.totalorder %s1524_s17, %s1520_s3 }
 0x34d   : > { %p1522_p5 = pnand %p1521_p0, %p1782_p3 }
 0x34e   : > { %p1527_p4 = por %p1526_p1, %p1525_p7 }
 0x34f   : > { %p1523_p10 = pneg %p1522_p5 }
 0x351   : > { %p1528_p8 = pnand %p1527_p4, %p1523_p10 }
 0x353   : > { %1531 = shalt.err (!%p1528_p8)
}
 0x354   : > { %1254 = dma.vmem_to_hbm [thread:$0]  (%p1782_p3), %s2000_s26, 128, %s1998_s8, %s956_s24   ;;  %v951_v57 = vpop.f32.mrf.mxu1 }
 0x356   : > { %v1241_v58 = vpop.f32.mrf.mxu1 }
 0x357 PF: > { %s982_s4 = sand.u32 1, %s1598_s18   ;;  %p2076_p11 = scmp.ge.s32.totalorder %s1618_s23, 2 }
 0x358   : > { %s983_s28 = scalar_lea.sflag [#allocation5], %s982_s4 }
 0x359   : > { %p1271_p2 = pnand %p2076_p11, %p1730_p6 }
 0x35b   : > { %p1272_p9 = pneg %p1271_p2 }
 0x35d   : > { %1593 = dma.done.wait (%p1272_p9), %s983_s28, 128  }
 0x35e   : > { %1595 = vsyncadd (%p1272_p9), %s983_s28, 4294967168  ;;  %s25_s23 = sadd.s32 1, %s1618_s23   ;;  %s2077_s29 = sld [smem:[#allocation17_spill]] }
 0x35f   : > { %p22_p12 = scmp.ge.s32.totalorder %s25_s23, 4   ;;  %s2078_s18 = smov %s1602_s19 }
 0x360   : > { %s2079_s19 = smov %s1606_s20  ;;  %s2080_s20 = smov %s1791_s9 }
 0x361   : > { %s2081_s21 = smov %s1614_s22  ;;  %24 = sbr.rel (!%p22_p12) target bundleno = 13 (0xd), region = 126 }
 0x364   : > { %s2082_s22 = smov %s2077_s29 }
 0x366   :  { %988 = vsyncpa [#allocation4], 1 }
 0x367   :  { %990 = vsyncpa [#allocation4 + $0x1], 1 }
 0x368   :  { %991 = vsyncpa [#allocation7], 1 }
 0x369   :  { %993 = vsyncpa [#allocation7 + $0x1], 1 }
 0x36a   :  { %994 = vsyncpa [#allocation10], 1 }
 0x36b   :  { %995 = vsyncpa [#allocation5], 1 }
 0x36c   :  { %997 = vsyncpa [#allocation5 + $0x1], 1 }

</bundles_post_ra>
